<compile_context>
chip_gen: v7x
topology: tpu7x:2x2x1
jax: 0.10.0
libtpu: 0.0.40
codegen_flags: <defaults>
</compile_context>

<pallas_src>
import functools

import jax
import jax.numpy as jnp
from jax.experimental import pallas as pl
from jax.experimental.pallas import tpu as pltpu

HIDDEN = 64


def actor_kernel(xT_ref, w1_ref, b1_ref, w2_ref, b2_ref, wh_ref, bh_ref,
                 out_ref, *, two_a):
    """One batch tile of the Actor forward, feature-major (batch on lanes).

    out_ref sublane rows: [ mu (0:A) | log_sigma (A:2A) | exp(mu) (2A:3A) | sigma (3A:4A) ]
    """
    xT = xT_ref[...]                                                # (S, TB)
    h1 = jnp.tanh(
        jnp.dot(w1_ref[...], xT, preferred_element_type=jnp.float32)
        + b1_ref[...])                                              # (H, TB) f32
    h2 = jnp.tanh(
        jnp.dot(w2_ref[...], h1.astype(w2_ref.dtype),
                preferred_element_type=jnp.float32)
        + b2_ref[...])                                              # (H, TB) f32
    head = (jnp.dot(wh_ref[...], h2.astype(wh_ref.dtype),
                    preferred_element_type=jnp.float32)
            + bh_ref[...])                                          # (2A, TB) = [mu; log_sigma]
    # exp over the full head: exp(mu) is free EUP filler on the same vregs, so
    # no lane-offset slice / lane concat is needed.  Two aligned sublane-slab
    # stores (offset two_a = one full 8-row sublane group for A=4).
    out_ref[:two_a, :] = head
    out_ref[two_a:, :] = jnp.exp(head)


def actor_forward(x, params, *, batch_tile=4096, matmul_dtype=jnp.float32,
                  core_parallel=False):
    """x: (B, state_size) float32. Returns (mu, sigma, log_sigma), each (B, action_size)."""
    w1, b1, w2, b2, wmu, bmu, wsg, bsg = params
    B, S = x.shape
    H = w1.shape[1]
    A = wmu.shape[1]

    # --- feature-major operands (batch on the lane axis) -------------------
    xT = x.T                                          # (S, B)
    w1T = w1.T                                        # (H, S)
    w2T = w2.T                                        # (H, H)
    whT = jnp.concatenate([wmu, wsg], axis=1).T       # (2A, H)  fused mu|log_sigma head
    b1T = b1.T                                        # (H, 1)
    b2T = b2.T                                        # (H, 1)
    bhT = jnp.concatenate([bmu, bsg], axis=1).T       # (2A, 1)

    if matmul_dtype != jnp.float32:
        # Cast MXU operands once, host-side, instead of per grid step in the
        # kernel. Biases / tanh / exp stay f32 (v5e has no bf16 VPU/EUP).
        xT = xT.astype(matmul_dtype)
        w1T = w1T.astype(matmul_dtype)
        w2T = w2T.astype(matmul_dtype)
        whT = whT.astype(matmul_dtype)

    # --- batch tiling: no host-side pad, ragged last block is masked -------
    if B <= batch_tile:
        TB = B                                         # single grid step; block == full dim
    else:
        TB = max(128, (batch_tile // 128) * 128)       # lane-dense, unmasked stores
    grid = (pl.cdiv(B, TB),)

    x_bytes = xT.size * xT.dtype.itemsize
    w_bytes = (w1T.size * w1T.dtype.itemsize + w2T.size * w2T.dtype.itemsize
               + whT.size * whT.dtype.itemsize + 4 * (2 * H + 2 * A))
    out_bytes = 4 * B * 4 * A
    cost = pl.CostEstimate(
        flops=2 * B * (S * H + H * H + H * 2 * A),
        transcendentals=B * (2 * H + 2 * A),           # 2 tanh layers + exp over full head
        bytes_accessed=x_bytes + w_bytes + out_bytes)

    if core_parallel:
        # v7x: shard the batch grid axis across the 2 TensorCores.  Only
        # meaningful when the grid has >= 2 steps.
        dim_sem = (pltpu.CORE_PARALLEL,)
    else:
        dim_sem = ("parallel",)

    kernel = functools.partial(actor_kernel, two_a=2 * A)

    packed = pl.pallas_call(
        kernel,
        out_shape=jax.ShapeDtypeStruct((4 * A, B), jnp.float32),
        grid=grid,
        in_specs=[
            pl.BlockSpec((S, TB), lambda i: (0, i)),        # x^T: streamed per tile
            pl.BlockSpec((H, S), lambda i: (0, 0)),         # w1^T: resident
            pl.BlockSpec((H, 1), lambda i: (0, 0)),         # b1^T
            pl.BlockSpec((H, H), lambda i: (0, 0)),         # w2^T
            pl.BlockSpec((H, 1), lambda i: (0, 0)),         # b2^T
            pl.BlockSpec((2 * A, H), lambda i: (0, 0)),     # fused head weight^T
            pl.BlockSpec((2 * A, 1), lambda i: (0, 0)),     # fused head bias^T
        ],
        out_specs=pl.BlockSpec((4 * A, TB), lambda i: (0, i)),
        compiler_params=pltpu.CompilerParams(dimension_semantics=dim_sem),
        cost_estimate=cost,
    )(xT, w1T, b1T, w2T, b2T, whT, bhT)

    # Unpack (free XLA slices + small layout transposes back to (B, A)).
    mu = packed[:A, :].T
    log_sigma = packed[A:2 * A, :].T
    sigma = packed[3 * A:, :].T
    return mu, sigma, log_sigma


def init_actor_params(key, state_size, action_size):
    """Deterministic init mirroring nn.Linear default (uniform +-1/sqrt(fan_in)),
    with the PyTorch-module tweaks: mu.weight *= 0.1, mu.bias *= 0.0."""
    def linear(key, fan_in, fan_out):
        kw, kb = jax.random.split(key)
        bound = 1.0 / jnp.sqrt(float(fan_in))
        w = jax.random.uniform(kw, (fan_in, fan_out), jnp.float32, -bound, bound)
        b = jax.random.uniform(kb, (1, fan_out), jnp.float32, -bound, bound)
        return w, b

    k1, k2, k3, k4 = jax.random.split(key, 4)
    w1, b1 = linear(k1, state_size, HIDDEN)
    w2, b2 = linear(k2, HIDDEN, HIDDEN)
    wmu, bmu = linear(k3, HIDDEN, action_size)
    wmu = wmu * 0.1
    bmu = bmu * 0.0
    wsg, bsg = linear(k4, HIDDEN, action_size)
    return (w1, b1, w2, b2, wmu, bmu, wsg, bsg)


def actor_reference(x, params):
    """Pure-JAX reference for correctness checking."""
    w1, b1, w2, b2, wmu, bmu, wsg, bsg = params
    h1 = jnp.tanh(x @ w1 + b1)
    h2 = jnp.tanh(h1 @ w2 + b2)
    mu = h2 @ wmu + bmu
    log_sigma = h2 @ wsg + bsg
    return mu, jnp.exp(log_sigma), log_sigma


if __name__ == "__main__":
    key = jax.random.PRNGKey(0)
    k_params, k_x = jax.random.split(key)

    batch = 8
    state_size = 8
    action_size = 4

    params = init_actor_params(k_params, state_size, action_size)
    x = jax.random.normal(k_x, (batch, state_size), dtype=jnp.float32)

    mu_ref, sigma_ref, logsig_ref = actor_reference(x, params)

    # Default path: f32 matmul operands (bit-tight vs reference).
    mu, sigma, log_sigma = actor_forward(x, params)
    jax.block_until_ready((mu, sigma, log_sigma))
    assert jnp.allclose(mu, mu_ref, atol=1e-5), "mu mismatch"
    assert jnp.allclose(sigma, sigma_ref, atol=1e-5), "sigma mismatch"
    assert jnp.allclose(log_sigma, logsig_ref, atol=1e-5), "log_sigma mismatch"

    # Optional bf16-operand MXU path (v6e/v7x throughput); looser tolerances,
    # including sigma (exp amplifies bf16 error).
    mu_b, sigma_b, logsig_b = actor_forward(x, params, matmul_dtype=jnp.bfloat16)
    jax.block_until_ready((mu_b, sigma_b, logsig_b))
    assert jnp.allclose(mu_b, mu_ref, atol=2e-2), "mu (bf16 matmul) mismatch"
    assert jnp.allclose(logsig_b, logsig_ref, atol=2e-2), "log_sigma (bf16 matmul) mismatch"
    assert jnp.allclose(sigma_b, sigma_ref, atol=5e-2, rtol=5e-2), "sigma (bf16 matmul) mismatch"

    print("KERNEL_OK")
</pallas_src>

<mosaic_0001>
module attributes {stable_mosaic.version = 11 : i64} {
  func.func @actor_kernel(%arg0: i32, %arg1: memref<8x8xf32, #tpu.memory_space<vmem>>, %arg2: memref<64x8xf32, #tpu.memory_space<vmem>>, %arg3: memref<64x1xf32, #tpu.memory_space<vmem>>, %arg4: memref<64x64xf32, #tpu.memory_space<vmem>>, %arg5: memref<64x1xf32, #tpu.memory_space<vmem>>, %arg6: memref<8x64xf32, #tpu.memory_space<vmem>>, %arg7: memref<8x1xf32, #tpu.memory_space<vmem>>, %arg8: memref<16x8xf32, #tpu.memory_space<vmem>>) attributes {dimension_semantics = [#tpu.dimension_semantics<parallel>], iteration_bounds = array<i64: 1>, scalar_prefetch = 0 : i64, scratch_operands = 0 : i64, tpu.core_type = #tpu.core_type<tc>, window_params = [{transform_indices = @transform_0, window_bounds = array<i64: 8, 8>}, {pipeline_mode = #tpu.pipeline_mode<synchronous>, transform_indices = @transform_1, window_bounds = array<i64: 64, 8>}, {pipeline_mode = #tpu.pipeline_mode<synchronous>, transform_indices = @transform_2, window_bounds = array<i64: 64, 1>}, {pipeline_mode = #tpu.pipeline_mode<synchronous>, transform_indices = @transform_3, window_bounds = array<i64: 64, 64>}, {pipeline_mode = #tpu.pipeline_mode<synchronous>, transform_indices = @transform_4, window_bounds = array<i64: 64, 1>}, {pipeline_mode = #tpu.pipeline_mode<synchronous>, transform_indices = @transform_5, window_bounds = array<i64: 8, 64>}, {pipeline_mode = #tpu.pipeline_mode<synchronous>, transform_indices = @transform_6, window_bounds = array<i64: 8, 1>}, {transform_indices = @transform_7, window_bounds = array<i64: 16, 8>}]} {
    %c0 = arith.constant 0 : index
    %c0_0 = arith.constant 0 : index
    %0 = vector.load %arg1[%c0, %c0_0] : memref<8x8xf32, #tpu.memory_space<vmem>>, vector<8x8xf32>
    %c0_1 = arith.constant 0 : index
    %c0_2 = arith.constant 0 : index
    %1 = vector.load %arg2[%c0_1, %c0_2] : memref<64x8xf32, #tpu.memory_space<vmem>>, vector<64x8xf32>
    %cst = arith.constant dense<0.000000e+00> : vector<64x8xf32>
    %2 = tpu.matmul %1, %0, %cst {dimension_numbers = #tpu.dot_dimension_numbers<[1], [0], [0], [1], [0, 0, 1, 1], [], []>} : vector<64x8xf32>, vector<8x8xf32>, vector<64x8xf32> -> vector<64x8xf32>
    %c0_3 = arith.constant 0 : index
    %c0_4 = arith.constant 0 : index
    %3 = vector.load %arg3[%c0_3, %c0_4] : memref<64x1xf32, #tpu.memory_space<vmem>>, vector<64x1xf32>
    %4 = vector.broadcast %3 : vector<64x1xf32> to vector<64x8xf32>
    %5 = arith.addf %2, %4 : vector<64x8xf32>
    %6 = math.tanh %5 : vector<64x8xf32>
    %c0_5 = arith.constant 0 : index
    %c0_6 = arith.constant 0 : index
    %7 = vector.load %arg4[%c0_5, %c0_6] : memref<64x64xf32, #tpu.memory_space<vmem>>, vector<64x64xf32>
    %cst_7 = arith.constant dense<0.000000e+00> : vector<64x8xf32>
    %8 = tpu.matmul %7, %6, %cst_7 {dimension_numbers = #tpu.dot_dimension_numbers<[1], [0], [0], [1], [0, 0, 1, 1], [], []>} : vector<64x64xf32>, vector<64x8xf32>, vector<64x8xf32> -> vector<64x8xf32>
    %c0_8 = arith.constant 0 : index
    %c0_9 = arith.constant 0 : index
    %9 = vector.load %arg5[%c0_8, %c0_9] : memref<64x1xf32, #tpu.memory_space<vmem>>, vector<64x1xf32>
    %10 = vector.broadcast %9 : vector<64x1xf32> to vector<64x8xf32>
    %11 = arith.addf %8, %10 : vector<64x8xf32>
    %12 = math.tanh %11 : vector<64x8xf32>
    %c0_10 = arith.constant 0 : index
    %c0_11 = arith.constant 0 : index
    %13 = vector.load %arg6[%c0_10, %c0_11] : memref<8x64xf32, #tpu.memory_space<vmem>>, vector<8x64xf32>
    %cst_12 = arith.constant dense<0.000000e+00> : vector<8x8xf32>
    %14 = tpu.matmul %13, %12, %cst_12 {dimension_numbers = #tpu.dot_dimension_numbers<[1], [0], [0], [1], [0, 0, 1, 1], [], []>} : vector<8x64xf32>, vector<64x8xf32>, vector<8x8xf32> -> vector<8x8xf32>
    %c0_13 = arith.constant 0 : index
    %c0_14 = arith.constant 0 : index
    %15 = vector.load %arg7[%c0_13, %c0_14] : memref<8x1xf32, #tpu.memory_space<vmem>>, vector<8x1xf32>
    %16 = vector.broadcast %15 : vector<8x1xf32> to vector<8x8xf32>
    %17 = arith.addf %14, %16 : vector<8x8xf32>
    %c0_15 = arith.constant 0 : index
    %c0_16 = arith.constant 0 : index
    %18 = vector.load %arg8[%c0_15, %c0_16] : memref<16x8xf32, #tpu.memory_space<vmem>>, vector<8x8xf32>
    tpu.vector_store %arg8[%c0_15, %c0_16], %17 {strides = array<i32>} : memref<16x8xf32, #tpu.memory_space<vmem>>, vector<8x8xf32>,
    %19 = math.exp %17 : vector<8x8xf32>
    %c8 = arith.constant 8 : index
    %c0_17 = arith.constant 0 : index
    %20 = vector.load %arg8[%c8, %c0_17] : memref<16x8xf32, #tpu.memory_space<vmem>>, vector<8x8xf32>
    tpu.vector_store %arg8[%c8, %c0_17], %19 {strides = array<i32>} : memref<16x8xf32, #tpu.memory_space<vmem>>, vector<8x8xf32>,
    return
  }
  func.func @transform_0(%arg0: i32) -> (i32, i32) {
    %c0_i32 = arith.constant 0 : i32
    %c0_i32_0 = arith.constant 0 : i32
    return %c0_i32, %arg0 : i32, i32
  }
  func.func @transform_1(%arg0: i32) -> (i32, i32) {
    %c0_i32 = arith.constant 0 : i32
    %c0_i32_0 = arith.constant 0 : i32
    %c0_i32_1 = arith.constant 0 : i32
    return %c0_i32, %c0_i32_0 : i32, i32
  }
  func.func @transform_2(%arg0: i32) -> (i32, i32) {
    %c0_i32 = arith.constant 0 : i32
    %c0_i32_0 = arith.constant 0 : i32
    %c0_i32_1 = arith.constant 0 : i32
    return %c0_i32, %c0_i32_0 : i32, i32
  }
  func.func @transform_3(%arg0: i32) -> (i32, i32) {
    %c0_i32 = arith.constant 0 : i32
    %c0_i32_0 = arith.constant 0 : i32
    %c0_i32_1 = arith.constant 0 : i32
    return %c0_i32, %c0_i32_0 : i32, i32
  }
  func.func @transform_4(%arg0: i32) -> (i32, i32) {
    %c0_i32 = arith.constant 0 : i32
    %c0_i32_0 = arith.constant 0 : i32
    %c0_i32_1 = arith.constant 0 : i32
    return %c0_i32, %c0_i32_0 : i32, i32
  }
  func.func @transform_5(%arg0: i32) -> (i32, i32) {
    %c0_i32 = arith.constant 0 : i32
    %c0_i32_0 = arith.constant 0 : i32
    %c0_i32_1 = arith.constant 0 : i32
    return %c0_i32, %c0_i32_0 : i32, i32
  }
  func.func @transform_6(%arg0: i32) -> (i32, i32) {
    %c0_i32 = arith.constant 0 : i32
    %c0_i32_0 = arith.constant 0 : i32
    %c0_i32_1 = arith.constant 0 : i32
    return %c0_i32, %c0_i32_0 : i32, i32
  }
  func.func @transform_7(%arg0: i32) -> (i32, i32) {
    %c0_i32 = arith.constant 0 : i32
    %c0_i32_0 = arith.constant 0 : i32
    return %c0_i32, %arg0 : i32, i32
  }
}

</mosaic_0001>

<bundles_post_ra>
// kernel: tpu_custom_call.1
= control target key start
LH: loop header
LB: loop body
LE: loop exit
PB: predicated region body
PF: predicated region fallthrough
CT: control target
= control target key end

     0   :  { %vm83_vm0 = vcmask 64512   ;;  %v683_v3 = vmov 0   ;;  %vm277_vm1 = vcmask 523264   ;;  %vm685_vm2 = vmmov 0   ;;  %s857_s0 = inlined_call_operand.vmem [shape: f32[8,8], index: 0, kind: input, shape index: {}]   ;;  %s858_s1 = inlined_call_operand.vmem [shape: f32[64,8], index: 1, kind: input, shape index: {}]   ;;  %s859_s2 = inlined_call_operand.vmem [shape: f32[64,1], index: 2, kind: input, shape index: {}]   ;;  %s860_s4 = inlined_call_operand.vmem [shape: f32[64,1], index: 4, kind: input, shape index: {}]   ;;  %s861_s6 = inlined_call_operand.vmem [shape: f32[8,1], index: 6, kind: input, shape index: {}]   ;;  %s862_s3 = inlined_call_operand.vmem [shape: f32[64,64], index: 3, kind: input, shape index: {}]   ;;  %s863_s5 = inlined_call_operand.vmem [shape: f32[8,64], index: 5, kind: input, shape index: {}]   ;;  %s864_s7 = inlined_call_operand.vmem [shape: f32[16,8], index: 7, kind: output, shape index: {}]  }
   0x1   :  { %v26_v0 = vld [vmem:[%s857_s0] sm:$0xff]  ;;  %v28_v2 = vld [vmem:[%s858_s1 + $0x8] sm:$0xff]  ;;  %647 = vset.pattern.permute.xlu0 %v683_v3  ;;  %648 = vset.pattern.permute.xlu1 %v683_v3  ;;  %v29_v4 = vld [vmem:[%s858_s1 + $0x10] sm:$0xff] }
   0x2   :  { %v27_v1 = vld [vmem:[%s858_s1] sm:$0xff]  ;;  %554 = vmatprep.subr.mxu0 %v26_v0  ;;  %v37_v6 = vld [vmem:[%s859_s2 + $0x10] sm:$0xff]  ;;  %v30_v7 = vld [vmem:[%s858_s1 + $0x18] sm:$0xff] }
   0x3   :  { %556 = vmatprep.mubr.msk.f32.mxu0 %vm83_vm0, %v27_v1  ;;  %555 = vmatpush3.msra.mxu0 %v26_v0  ;;  %v35_v5 = vld [vmem:[%s859_s2] sm:$0xff]  ;;  %v36_v9 = vld [vmem:[%s859_s2 + $0x8] sm:$0xff]  ;;  %v38_v10 = vld [vmem:[%s859_s2 + $0x18] sm:$0xff] }
   0x4   :  { %557 = vmatmul.mubr.msk.f32.vlgmr.msra.gmra.mrb[0].mxu0 %vm83_vm0, %v28_v2  ;;  %45 = vperm.xlu0 %647, %v35_v5   ;;  %v31_v8 = vld [vmem:[%s858_s1 + $0x20] sm:$0xff]  ;;  %v32_v11 = vld [vmem:[%s858_s1 + $0x28] sm:$0xff]  ;;  %v33_v12 = vld [vmem:[%s858_s1 + $0x30] sm:$0xff] }
   0x5   :  { %559 = vmatprep.mubr.msk.f32.mxu0 %vm83_vm0, %v29_v4  ;;  %55 = vperm.xlu1 %648, %v37_v6   ;;  %v39_v13 = vld [vmem:[%s859_s2 + $0x20] sm:$0xff]  ;;  %v40_v14 = vld [vmem:[%s859_s2 + $0x28] sm:$0xff]  ;;  %v34_v15 = vld [vmem:[%s858_s1 + $0x38] sm:$0xff] }
   0x6   :  { %v41_v16 = vld [vmem:[%s859_s2 + $0x30] sm:$0xff]  ;;  %v42_v17 = vld [vmem:[%s859_s2 + $0x38] sm:$0xff]  ;;  %v229_v18 = vld [vmem:[%s860_s4] sm:$0xff] }
   0x7   :  { %v230_v19 = vld [vmem:[%s860_s4 + $0x8] sm:$0xff]  ;;  %v231_v20 = vld [vmem:[%s860_s4 + $0x10] sm:$0xff]  ;;  %v232_v21 = vld [vmem:[%s860_s4 + $0x18] sm:$0xff] }
   0x8   :  { %560 = vmatmul.mubr.msk.f32.gmra.mrb[2].mxu0 %vm83_vm0, %v30_v7  ;;  %50 = vperm.xlu0 %647, %v36_v9   ;;  %v233_v22 = vld [vmem:[%s860_s4 + $0x20] sm:$0xff]  ;;  %v234_v23 = vld [vmem:[%s860_s4 + $0x28] sm:$0xff]  ;;  %v235_v24 = vld [vmem:[%s860_s4 + $0x30] sm:$0xff]  ;;  %v684_v7 = vmov 0.0|0.0  }
   0x9   :  { %562 = vmatprep.mubr.msk.f32.mxu0 %vm83_vm0, %v31_v8  ;;  %60 = vperm.xlu1 %648, %v38_v10   ;;  %v236_v25 = vld [vmem:[%s860_s4 + $0x38] sm:$0xff]  ;;  %v416_v26 = vld [vmem:[%s861_s6] sm:$0xff]  ;;  %v222_v0 = vld [vmem:[%s862_s3 + $0x8] sm:$0xff]  ;;  %v686_v8 = vmov 0.0  }
   0xa   :  { %v221_v27 = vld [vmem:[%s862_s3] sm:$0xff]  ;;  %v223_v1 = vld [vmem:[%s862_s3 + $0x10] sm:$0xff]  ;;  %v224_v2 = vld [vmem:[%s862_s3 + $0x18] sm:$0xff]  ;;  %631 = vmatprep.subr.bf16.mxu0 %v684_v7 }
   0xb   :  { %584 = vmatprep.mubr.msk.f32.mxu1 %vm277_vm1, %v221_v27  ;;  %v225_v3 = vld [vmem:[%s862_s3 + $0x20] sm:$0xff]  ;;  %v226_v4 = vld [vmem:[%s862_s3 + $0x28] sm:$0xff]  ;;  %v227_v5 = vld [vmem:[%s862_s3 + $0x30] sm:$0xff] }
   0xc   :  { %563 = vmatmul.mubr.msk.f32.gmra.mrb[4].mxu0 %vm83_vm0, %v32_v11  ;;  %65 = vperm.xlu0 %647, %v39_v13   ;;  %v228_v6 = vld [vmem:[%s862_s3 + $0x38] sm:$0xff] }
   0xd   :  { %565 = vmatprep.mubr.msk.f32.mxu0 %vm83_vm0, %v33_v12  ;;  %70 = vperm.xlu1 %648, %v40_v14  }
  0x10   :  { %566 = vmatmul.mubr.msk.f32.gmra.mrb[6].mxu0 %vm83_vm0, %v34_v15  ;;  %75 = vperm.xlu0 %647, %v41_v16  }
  0x11   :  { %80 = vperm.xlu1 %648, %v42_v17   ;;  %612 = vmatprep.mubr.msk.f32.mxu0 %vm685_vm2, %v686_v8 }
  0x14   :  { %239 = vperm.xlu0 %647, %v229_v18  }
  0x15   :  { %244 = vperm.xlu1 %648, %v230_v19  }
  0x18   :  { %249 = vperm.xlu0 %647, %v231_v20  }
  0x19   :  { %254 = vperm.xlu1 %648, %v232_v21  }
  0x1c   :  { %259 = vperm.xlu0 %647, %v233_v22  }
  0x1d   :  { %264 = vperm.xlu1 %648, %v234_v23  }
  0x20   :  { %269 = vperm.xlu0 %647, %v235_v24  }
  0x21   :  { %274 = vperm.xlu1 %648, %v236_v25  }
  0x24   :  { %419 = vperm.xlu0 %647, %v416_v26  }
  0x83   :  { %v46_v28 = vpop.permute.xlu0 %45 }
  0x84   :  { %v56_v29 = vpop.permute.xlu1 %55 }
  0x87   :  { %v51_v30 = vpop.permute.xlu0 %50 }
  0x88   :  { %v61_v31 = vpop.permute.xlu1 %60 }
  0x8b   :  { %v66_v41 = vpop.permute.xlu0 %65 }
  0x8c   :  { %v71_v39 = vpop.permute.xlu1 %70 }
  0x8f   :  { %v76_v49 = vpop.permute.xlu0 %75 }
  0x90   :  { %v81_v46 = vpop.permute.xlu1 %80 }
  0x93   :  { %v240_v10 = vpop.permute.xlu0 %239 }
  0x94   :  { %v245_v9 = vpop.permute.xlu1 %244 }
  0x97   :  { %v250_v13 = vpop.permute.xlu0 %249 }
  0x98   :  { %v255_v11 = vpop.permute.xlu1 %254 }
  0x9b   :  { %v260_v22 = vpop.permute.xlu0 %259 }
  0x9c   :  { %v265_v20 = vpop.permute.xlu1 %264 }
  0xa0   :  { %v275_v27 = vpop.permute.xlu1 %274 }
  0xd7   :  { %v558_v32 = vpop.f32.mrb[0].mxu0 }
  0xd8   :  { %v180_v33 = vadd.f32 %v558_v32, %v51_v30  ;;  %v174_v34 = vpop.f32.mrb[1].mxu0  ;;  %v270_v30 = vpop.permute.xlu0 %269 }
  0xd9   :  { %v175_v35 = vadd.f32 %v174_v34, %v46_v28 }
  0xda   :  { %649 = vtanh.f32 %v180_v33 }
  0xdb   :  { %651 = vtanh.f32 %v175_v35  ;;  %v561_v36 = vpop.f32.mrb[2].mxu0 }
  0xdc   :  { %v190_v37 = vadd.f32 %v561_v36, %v61_v31  ;;  %v184_v38 = vpop.f32.mrb[3].mxu0 }
  0xdd   :  { %v185_v40 = vadd.f32 %v184_v38, %v56_v29 }
  0xde   :  { %653 = vtanh.f32 %v190_v37 }
  0xdf   :  { %655 = vtanh.f32 %v185_v40  ;;  %v564_v42 = vpop.f32.mrb[4].mxu0 }
  0xe0   :  { %v200_v43 = vadd.f32 %v564_v42, %v71_v39  ;;  %v194_v44 = vpop.f32.mrb[5].mxu0 }
  0xe1   :  { %v195_v45 = vadd.f32 %v194_v44, %v66_v41 }
  0xe2   :  { %657 = vtanh.f32 %v200_v43 }
  0xe3   :  { %659 = vtanh.f32 %v195_v45  ;;  %v567_v47 = vpop.f32.mrb[6].mxu0  ;;  %v415_v45 = vld [vmem:[%s863_s5] sm:$0xff] }
  0xe4   :  { %v650_v48 = vpop.eup %649  ;;  %v210_v50 = vadd.f32 %v567_v47, %v81_v46  ;;  %v204_v51 = vpop.f32.mrb[7].mxu0 }
  0xe5   :  { %v652_v52 = vpop.eup %651  ;;  %v205_v53 = vadd.f32 %v204_v51, %v76_v49  ;;  %v420_v46 = vpop.permute.xlu0 %419 }
  0xe6   :  { %661 = vtanh.f32 %v210_v50  ;;  %v615_v54 = vpack.c.bf16 %v650_v48, %v652_v52 }
  0xe7   :  { %663 = vtanh.f32 %v205_v53 }
  0xe8   :  { %v654_v55 = vpop.eup %653  ;;  %616 = vmatprep.subr.bf16.mxu1 %v615_v54 }
  0xe9   :  { %v656_v56 = vpop.eup %655  ;;  %618 = vmatpush3.bf16.msra.mxu1 %v615_v54 }
  0xea   :  { %v619_v57 = vpack.c.bf16 %v654_v55, %v656_v56 }
  0xec   :  { %v658_v58 = vpop.eup %657  ;;  %620 = vmatprep.subr.bf16.mxu1 %v619_v57 }
  0xed   :  { %v660_v59 = vpop.eup %659  ;;  %622 = vmatpush3.bf16.msra.mxu1 %v619_v57 }
  0xee   :  { %v623_v60 = vpack.c.bf16 %v658_v58, %v660_v59 }
  0xf0   :  { %v662_v61 = vpop.eup %661  ;;  %624 = vmatprep.subr.bf16.mxu1 %v623_v60 }
  0xf1   :  { %v664_v62 = vpop.eup %663  ;;  %626 = vmatpush3.bf16.msra.mxu1 %v623_v60 }
  0xf2   :  { %v627_v63 = vpack.c.bf16 %v662_v61, %v664_v62 }
  0xf4   :  { %628 = vmatprep.subr.bf16.mxu1 %v627_v63 }
  0xf5   :  { %630 = vmatpush3.bf16.msra.mxu1 %v627_v63 }
  0xf8   :  { %585 = vmatmul.mubr.msk.f32.vlgmr.msra.gmra.mrb[0].mxu1 %vm277_vm1, %v222_v0 }
  0xf9   :  { %587 = vmatprep.mubr.msk.f32.mxu1 %vm277_vm1, %v223_v1 }
  0xfc   :  { %588 = vmatmul.mubr.msk.f32.gmra.mrb[2].mxu1 %vm277_vm1, %v224_v2 }
  0xfd   :  { %590 = vmatprep.mubr.msk.f32.mxu1 %vm277_vm1, %v225_v3 }
 0x100   :  { %591 = vmatmul.mubr.msk.f32.gmra.mrb[4].mxu1 %vm277_vm1, %v226_v4 }
 0x101   :  { %593 = vmatprep.mubr.msk.f32.mxu1 %vm277_vm1, %v227_v5 }
 0x104   :  { %594 = vmatmul.mubr.msk.f32.gmra.mrb[6].mxu1 %vm277_vm1, %v228_v6 }
 0x1cb   :  { %v586_v12 = vpop.f32.mrb[0].mxu1 }
 0x1cc   :  { %v374_v14 = vadd.f32 %v586_v12, %v245_v9  ;;  %v368_v15 = vpop.f32.mrb[1].mxu1 }
 0x1cd   :  { %v369_v16 = vadd.f32 %v368_v15, %v240_v10 }
 0x1ce   :  { %665 = vtanh.f32 %v374_v14 }
 0x1cf   :  { %667 = vtanh.f32 %v369_v16  ;;  %v589_v17 = vpop.f32.mrb[2].mxu1 }
 0x1d0   :  { %v384_v18 = vadd.f32 %v589_v17, %v255_v11  ;;  %v378_v19 = vpop.f32.mrb[3].mxu1 }
 0x1d1   :  { %v379_v21 = vadd.f32 %v378_v19, %v250_v13 }
 0x1d2   :  { %669 = vtanh.f32 %v384_v18 }
 0x1d3   :  { %671 = vtanh.f32 %v379_v21  ;;  %v592_v23 = vpop.f32.mrb[4].mxu1 }
 0x1d4   :  { %v394_v24 = vadd.f32 %v592_v23, %v265_v20  ;;  %v388_v25 = vpop.f32.mrb[5].mxu1 }
 0x1d5   :  { %v389_v26 = vadd.f32 %v388_v25, %v260_v22 }
 0x1d6   :  { %673 = vtanh.f32 %v394_v24 }
 0x1d7   :  { %675 = vtanh.f32 %v389_v26  ;;  %v595_v28 = vpop.f32.mrb[6].mxu1 }
 0x1d8   :  { %v666_v29 = vpop.eup %665  ;;  %v404_v31 = vadd.f32 %v595_v28, %v275_v27  ;;  %v398_v32 = vpop.f32.mrb[7].mxu1 }
 0x1d9   :  { %v668_v33 = vpop.eup %667  ;;  %v399_v34 = vadd.f32 %v398_v32, %v270_v30 }
 0x1da   :  { %677 = vtanh.f32 %v404_v31  ;;  %v632_v35 = vpack.c.bf16 %v666_v29, %v668_v33 }
 0x1db   :  { %679 = vtanh.f32 %v399_v34 }
 0x1dc   :  { %v670_v36 = vpop.eup %669  ;;  %633 = vmatpush3.bf16.msra.mxu0 %v632_v35 }
 0x1dd   :  { %v672_v37 = vpop.eup %671  ;;  %634 = vmatprep.subr.bf16.mxu0 %v684_v7 }
 0x1de   :  { %v635_v38 = vpack.c.bf16 %v670_v36, %v672_v37 }
 0x1e0   :  { %v674_v39 = vpop.eup %673  ;;  %636 = vmatpush3.bf16.msra.mxu0 %v635_v38 }
 0x1e1   :  { %v676_v40 = vpop.eup %675  ;;  %637 = vmatprep.subr.bf16.mxu0 %v684_v7 }
 0x1e2   :  { %v638_v41 = vpack.c.bf16 %v674_v39, %v676_v40 }
 0x1e4   :  { %v678_v42 = vpop.eup %677  ;;  %639 = vmatpush3.bf16.msra.mxu0 %v638_v41 }
 0x1e5   :  { %v680_v43 = vpop.eup %679  ;;  %640 = vmatprep.subr.bf16.mxu0 %v684_v7 }
 0x1e6   :  { %v641_v44 = vpack.c.bf16 %v678_v42, %v680_v43 }
 0x1e8   :  { %642 = vmatpush3.bf16.msra.mxu0 %v641_v44 }
 0x1eb   :  { %613 = vmatmul.mubr.msk.f32.vlgmr.msra.gmra.mrb[8].mxu0 %vm277_vm1, %v415_v45 }
 0x2be   :  { %v491_v47 = vpop.f32.mrb[8].mxu0 }
 0x2bf   :  { %v492_v48 = vadd.f32 %v491_v47, %v420_v46  ;;  %v614_v49 = vpop.f32.mrb[9].mxu0 }
 0x2c1   :  { %495 = vst.msk [vmem:[%s864_s7] sm:$0xff] %vm83_vm0, %v492_v48  ;;  %v496_v50 = vmul.f32 1.442695, %v492_v48 }
 0x2c3   :  { %681 = vpow2.f32 %v496_v50 }
 0x2cd   :  { %v682_v51 = vpop.eup %681 }
 0x2ce   :  { %498 = vst.msk [vmem:[%s864_s7 + $0x8] sm:$0xff] %vm83_vm0, %v682_v51 }

</bundles_post_ra>
